<compile_context>
chip_gen: v7x
topology: tpu7x:2x2x1
jax: 0.10.0
libtpu: 0.0.40
codegen_flags: <defaults>
</compile_context>

<pallas_src>
import functools

import jax
import jax.numpy as jnp
from jax import lax
from jax.experimental import pallas as pl
from jax.experimental.pallas import tpu as pltpu

LATENT_DIM = 10          # AAE default opt.latent_dim
H1, H2, OUT = 512, 256, 1


def _discriminator_kernel(z_ref, w1_ref, b1_ref, w2_ref, b2_ref, w3_ref, b3_ref,
                          out_ref, *, act_dtype):
    # ---- Linear 1 + LeakyReLU(0.2): bf16 MXU operands, fp32 accumulate -----
    h = jnp.dot(z_ref[...].astype(jnp.bfloat16), w1_ref[...],
                preferred_element_type=jnp.float32)
    h = h.astype(act_dtype) + b1_ref[...]          # (tile, 512) + (1, 512)
    h = jnp.maximum(h, 0.2 * h)                    # LeakyReLU, 2 VPU ops

    # ---- Linear 2 + LeakyReLU(0.2) ------------------------------------------
    h = jnp.dot(h.astype(jnp.bfloat16), w2_ref[...],
                preferred_element_type=jnp.float32)
    h = h.astype(act_dtype) + b2_ref[...]          # (tile, 256) + (1, 256)
    h = jnp.maximum(h, 0.2 * h)

    # ---- Linear 3 (256 -> 1) + Sigmoid --------------------------------------
    # Contract against the feature axis of h so logits land as a lane-dense
    # (1, tile) row (unmasked full-lane stores). w3_ref is (8, 256) bf16: real
    # weights in row 0, zero rows 1..7 keep the MXU operand sublane-aligned.
    logits = lax.dot_general(
        w3_ref[...], h.astype(jnp.bfloat16), (((1,), (1,)), ((), ())),
        preferred_element_type=jnp.float32)[0:1, :]          # (1, tile)
    logits = logits + b3_ref[...]                            # (1, 1) broadcast

    # Overflow-free sigmoid; reciprocal on the (otherwise idle) EUP slot.
    e = jnp.exp(-jnp.abs(logits))
    r = pl.reciprocal(1.0 + e, approx=True)
    out_ref[...] = jnp.where(logits >= 0.0, r, e * r).astype(out_ref.dtype)


def _default_act_dtype():
    """bf16 elementwise on v6e/v7x; fp32 on older chips (no bf16 VALU path)."""
    try:
        kind = jax.devices()[0].device_kind.lower()
        if "v2" in kind or "v3" in kind or "v4" in kind or "v5" in kind:
            return jnp.float32
    except Exception:
        pass
    return jnp.bfloat16


def _choose_tile_b(batch, requested):
    tile = min(int(requested), max(int(batch), 1))
    tile = ((tile + 127) // 128) * 128   # lane (128) aligned -> unmasked stores
    return max(tile, 128)


def discriminator_forward(z, params, *, tile_b=1024, act_dtype=None):
    """z: (B, LATENT_DIM) float32; params: dict of fp32 weights/biases."""
    B, D = z.shape
    assert D == LATENT_DIM
    if act_dtype is None:
        act_dtype = _default_act_dtype()

    # Big matmul weights as bf16 (halves weight DMA; fp32 accumulation inside).
    w1 = params["w1"].astype(jnp.bfloat16)                 # (D, 512)
    w2 = params["w2"].astype(jnp.bfloat16)                 # (512, 256)
    b1 = params["b1"].astype(act_dtype)                    # (1, 512)
    b2 = params["b2"].astype(act_dtype)                    # (1, 256)
    # Final layer weights as bf16, padded to 8 sublane rows (row 0 = real).
    w3_rows = jnp.zeros((8, H2), jnp.bfloat16).at[0, :].set(
        params["w3"].astype(jnp.bfloat16)[:, 0])           # (8, 256)
    b3 = params["b3"].astype(jnp.float32).reshape(1, 1)    # (1, 1)

    tile = _choose_tile_b(B, tile_b)
    num_tiles = pl.cdiv(B, tile)
    b_pad = num_tiles * tile
    if b_pad != B:
        z = jnp.pad(z, ((0, b_pad - B), (0, 0)))

    cp_kwargs = dict(dimension_semantics=("parallel",))
    if tile >= 2048:
        # Intermediates + resident weights + double-buffered z / output rows.
        est = (tile * (H1 + H2) * 4 * 2
               + (LATENT_DIM * H1 + H1 * H2 + 8 * H2) * 2
               + tile * LATENT_DIM * 4 * 2
               + tile * 4 * 2)
        cp_kwargs["vmem_limit_bytes"] = int(min(est + (8 << 20), 64 << 20))

    kernel = functools.partial(_discriminator_kernel, act_dtype=act_dtype)

    out_rows = pl.pallas_call(
        kernel,
        out_shape=jax.ShapeDtypeStruct((num_tiles, 1, tile), jnp.float32),
        grid_spec=pltpu.PrefetchScalarGridSpec(
            num_scalar_prefetch=0,
            grid=(num_tiles,),
            in_specs=[
                # z: tile over batch, full latent dim.
                pl.BlockSpec((tile, D), lambda i: (i, 0)),
                # weights / biases: full arrays, resident across grid steps
                # (constant index_map -> single fetch).
                pl.BlockSpec((D, H1), lambda i: (0, 0)),
                pl.BlockSpec((1, H1), lambda i: (0, 0)),
                pl.BlockSpec((H1, H2), lambda i: (0, 0)),
                pl.BlockSpec((1, H2), lambda i: (0, 0)),
                pl.BlockSpec((8, H2), lambda i: (0, 0)),
                pl.BlockSpec((1, 1), lambda i: (0, 0)),
            ],
            # Lane-dense output row per batch tile.
            out_specs=pl.BlockSpec((None, 1, tile), lambda i: (i, 0, 0)),
        ),
        compiler_params=pltpu.CompilerParams(**cp_kwargs),
    )(z, w1, b1, w2, b2, w3_rows, b3)

    # (num_tiles, 1, tile) -> (B, 1); element (i, 0, j) is batch row i*tile+j.
    return out_rows.reshape(-1, 1)[:B]


def init_params(key):
    """PyTorch nn.Linear default init: U(-1/sqrt(fan_in), 1/sqrt(fan_in))."""
    def linear(key, fan_in, fan_out):
        kw, kb = jax.random.split(key)
        bound = 1.0 / (fan_in ** 0.5)
        w = jax.random.uniform(kw, (fan_in, fan_out), jnp.float32, -bound, bound)
        b = jax.random.uniform(kb, (1, fan_out), jnp.float32, -bound, bound)
        return w, b

    k1, k2, k3 = jax.random.split(key, 3)
    w1, b1 = linear(k1, LATENT_DIM, H1)
    w2, b2 = linear(k2, H1, H2)
    w3, b3 = linear(k3, H2, OUT)
    return {"w1": w1, "b1": b1, "w2": w2, "b2": b2, "w3": w3, "b3": b3}


def reference_fp32(z, p):
    h = z @ p["w1"] + p["b1"]
    h = jnp.where(h > 0, h, 0.2 * h)
    h = h @ p["w2"] + p["b2"]
    h = jnp.where(h > 0, h, 0.2 * h)
    h = h @ p["w3"] + p["b3"]
    return jax.nn.sigmoid(h)


def reference_matched(z, p, act_dtype):
    """Same numerics as the kernel (bf16 matmul operands, act_dtype elementwise)."""
    h = jnp.dot(z.astype(jnp.bfloat16), p["w1"].astype(jnp.bfloat16),
                preferred_element_type=jnp.float32)
    h = h.astype(act_dtype) + p["b1"].astype(act_dtype)
    h = jnp.maximum(h, 0.2 * h)
    h = jnp.dot(h.astype(jnp.bfloat16), p["w2"].astype(jnp.bfloat16),
                preferred_element_type=jnp.float32)
    h = h.astype(act_dtype) + p["b2"].astype(act_dtype)
    h = jnp.maximum(h, 0.2 * h)
    logits = jnp.dot(h.astype(jnp.bfloat16), p["w3"].astype(jnp.bfloat16),
                     preferred_element_type=jnp.float32) + p["b3"]
    return jax.nn.sigmoid(logits.astype(jnp.float32))


if __name__ == "__main__":
    key = jax.random.PRNGKey(0)
    kz, kp = jax.random.split(key)

    params = init_params(kp)
    act_dtype = _default_act_dtype()

    # Case 1: B=100 (non-multiple of 128 -> padded to one 128-row tile).
    B1 = 100
    z1 = jax.random.normal(kz, (B1, LATENT_DIM), jnp.float32)
    out1 = jax.block_until_ready(discriminator_forward(z1, params))
    assert out1.shape == (B1, OUT), out1.shape

    err1_m = float(jnp.max(jnp.abs(out1 - reference_matched(z1, params, act_dtype))))
    err1_f = float(jnp.max(jnp.abs(out1 - reference_fp32(z1, params))))
    assert err1_m < 2e-3, f"mismatch vs matched reference: {err1_m}"
    assert err1_f < 3e-2, f"mismatch vs fp32 reference: {err1_f}"

    # Case 2: multi-tile grid (B=300, tile_b=128 -> 3 grid steps + padding).
    B2 = 300
    z2 = jax.random.normal(jax.random.PRNGKey(1), (B2, LATENT_DIM), jnp.float32)
    out2 = jax.block_until_ready(discriminator_forward(z2, params, tile_b=128))
    assert out2.shape == (B2, OUT), out2.shape
    err2_f = float(jnp.max(jnp.abs(out2 - reference_fp32(z2, params))))
    assert err2_f < 3e-2, f"multi-tile mismatch vs fp32 reference: {err2_f}"

    print("KERNEL_OK")
</pallas_src>

<mosaic_0001>
module attributes {stable_mosaic.version = 11 : i64} {
  func.func @_discriminator_kernel(%arg0: i32, %arg1: memref<128x10xf32, #tpu.memory_space<vmem>>, %arg2: memref<10x512xbf16, #tpu.memory_space<vmem>>, %arg3: memref<1x512xbf16, #tpu.memory_space<vmem>>, %arg4: memref<512x256xbf16, #tpu.memory_space<vmem>>, %arg5: memref<1x256xbf16, #tpu.memory_space<vmem>>, %arg6: memref<8x256xbf16, #tpu.memory_space<vmem>>, %arg7: memref<1x1xf32, #tpu.memory_space<vmem>>, %arg8: memref<1x1x128xf32, #tpu.memory_space<vmem>>) attributes {dimension_semantics = [#tpu.dimension_semantics<parallel>], iteration_bounds = array<i64: 1>, scalar_prefetch = 0 : i64, scratch_operands = 0 : i64, tpu.core_type = #tpu.core_type<tc>, window_params = [{transform_indices = @transform_0, window_bounds = array<i64: 128, 10>}, {pipeline_mode = #tpu.pipeline_mode<synchronous>, transform_indices = @transform_1, window_bounds = array<i64: 10, 512>}, {pipeline_mode = #tpu.pipeline_mode<synchronous>, transform_indices = @transform_2, window_bounds = array<i64: 1, 512>}, {pipeline_mode = #tpu.pipeline_mode<synchronous>, transform_indices = @transform_3, window_bounds = array<i64: 512, 256>}, {pipeline_mode = #tpu.pipeline_mode<synchronous>, transform_indices = @transform_4, window_bounds = array<i64: 1, 256>}, {pipeline_mode = #tpu.pipeline_mode<synchronous>, transform_indices = @transform_5, window_bounds = array<i64: 8, 256>}, {pipeline_mode = #tpu.pipeline_mode<synchronous>, transform_indices = @transform_6, window_bounds = array<i64: 1, 1>}, {transform_indices = @transform_7, window_bounds = array<i64: 1, 1, 128>}]} {
    %c0 = arith.constant 0 : index
    %c0_0 = arith.constant 0 : index
    %0 = vector.load %arg1[%c0, %c0_0] : memref<128x10xf32, #tpu.memory_space<vmem>>, vector<128x10xf32>
    %1 = arith.truncf %0 : vector<128x10xf32> to vector<128x10xbf16>
    %c0_1 = arith.constant 0 : index
    %c0_2 = arith.constant 0 : index
    %2 = vector.load %arg2[%c0_1, %c0_2] : memref<10x512xbf16, #tpu.memory_space<vmem>>, vector<10x512xbf16>
    %cst = arith.constant dense<0.000000e+00> : vector<128x512xf32>
    %3 = tpu.matmul %1, %2, %cst {dimension_numbers = #tpu.dot_dimension_numbers<[1], [0], [0], [1], [0, 0, 1, 1], [], []>} : vector<128x10xbf16>, vector<10x512xbf16>, vector<128x512xf32> -> vector<128x512xf32>
    %4 = arith.truncf %3 : vector<128x512xf32> to vector<128x512xbf16>
    %c0_3 = arith.constant 0 : index
    %c0_4 = arith.constant 0 : index
    %5 = vector.load %arg3[%c0_3, %c0_4] : memref<1x512xbf16, #tpu.memory_space<vmem>>, vector<1x512xbf16>
    %6 = vector.broadcast %5 : vector<1x512xbf16> to vector<128x512xbf16>
    %7 = arith.addf %4, %6 : vector<128x512xbf16>
    %cst_5 = arith.constant 2.001950e-01 : bf16
    %8 = vector.broadcast %cst_5 : bf16 to vector<128x512xbf16>
    %9 = arith.mulf %8, %7 : vector<128x512xbf16>
    %10 = arith.maximumf %7, %9 : vector<128x512xbf16>
    %c0_6 = arith.constant 0 : index
    %c0_7 = arith.constant 0 : index
    %11 = vector.load %arg4[%c0_6, %c0_7] : memref<512x256xbf16, #tpu.memory_space<vmem>>, vector<512x256xbf16>
    %cst_8 = arith.constant dense<0.000000e+00> : vector<128x256xf32>
    %12 = tpu.matmul %10, %11, %cst_8 {dimension_numbers = #tpu.dot_dimension_numbers<[1], [0], [0], [1], [0, 0, 1, 1], [], []>} : vector<128x512xbf16>, vector<512x256xbf16>, vector<128x256xf32> -> vector<128x256xf32>
    %13 = arith.truncf %12 : vector<128x256xf32> to vector<128x256xbf16>
    %c0_9 = arith.constant 0 : index
    %c0_10 = arith.constant 0 : index
    %14 = vector.load %arg5[%c0_9, %c0_10] : memref<1x256xbf16, #tpu.memory_space<vmem>>, vector<1x256xbf16>
    %15 = vector.broadcast %14 : vector<1x256xbf16> to vector<128x256xbf16>
    %16 = arith.addf %13, %15 : vector<128x256xbf16>
    %cst_11 = arith.constant 2.001950e-01 : bf16
    %17 = vector.broadcast %cst_11 : bf16 to vector<128x256xbf16>
    %18 = arith.mulf %17, %16 : vector<128x256xbf16>
    %19 = arith.maximumf %16, %18 : vector<128x256xbf16>
    %c0_12 = arith.constant 0 : index
    %c0_13 = arith.constant 0 : index
    %20 = vector.load %arg6[%c0_12, %c0_13] : memref<8x256xbf16, #tpu.memory_space<vmem>>, vector<8x256xbf16>
    %cst_14 = arith.constant dense<0.000000e+00> : vector<8x128xf32>
    %21 = tpu.matmul %20, %19, %cst_14 {dimension_numbers = #tpu.dot_dimension_numbers<[1], [1], [0], [0], [0, 0, 1, 0], [], []>} : vector<8x256xbf16>, vector<128x256xbf16>, vector<8x128xf32> -> vector<8x128xf32>
    %22 = vector.extract_strided_slice %21 {offsets = [0, 0], sizes = [1, 128], strides = [1, 1]} : vector<8x128xf32> to vector<1x128xf32>
    %c0_15 = arith.constant 0 : index
    %c0_16 = arith.constant 0 : index
    %23 = vector.load %arg7[%c0_15, %c0_16] : memref<1x1xf32, #tpu.memory_space<vmem>>, vector<1x1xf32>
    %24 = vector.broadcast %23 : vector<1x1xf32> to vector<1x128xf32>
    %25 = arith.addf %22, %24 : vector<1x128xf32>
    %26 = math.absf %25 : vector<1x128xf32>
    %cst_17 = arith.constant 0.000000e+00 : f32
    %27 = vector.broadcast %cst_17 : f32 to vector<1x128xf32>
    %28 = arith.subf %27, %26 : vector<1x128xf32>
    %29 = math.exp %28 : vector<1x128xf32>
    %cst_18 = arith.constant 1.000000e+00 : f32
    %30 = vector.broadcast %cst_18 : f32 to vector<1x128xf32>
    %31 = arith.addf %30, %29 : vector<1x128xf32>
    %32 = tpu.reciprocal %31 {approx = true} : vector<1x128xf32> -> vector<1x128xf32>
    %cst_19 = arith.constant 0.000000e+00 : f32
    %33 = vector.broadcast %cst_19 : f32 to vector<1x128xf32>
    %34 = arith.cmpf oge, %25, %33 : vector<1x128xf32>
    %35 = arith.mulf %29, %32 : vector<1x128xf32>
    %36 = arith.select %34, %32, %35 : vector<1x128xi1>, vector<1x128xf32>
    %c0_20 = arith.constant 0 : index
    %c0_21 = arith.constant 0 : index
    %c0_22 = arith.constant 0 : index
    %37 = vector.load %arg8[%c0_20, %c0_21, %c0_22] : memref<1x1x128xf32, #tpu.memory_space<vmem>>, vector<1x1x128xf32>
    %38 = vector.shape_cast %37 : vector<1x1x128xf32> to vector<1x128xf32>
    %39 = vector.shape_cast %36 : vector<1x128xf32> to vector<1x1x128xf32>
    tpu.vector_store %arg8[%c0_20, %c0_21, %c0_22], %39 {strides = array<i32>} : memref<1x1x128xf32, #tpu.memory_space<vmem>>, vector<1x1x128xf32>,
    return
  }
  func.func @transform_0(%arg0: i32) -> (i32, i32) {
    %c0_i32 = arith.constant 0 : i32
    %c0_i32_0 = arith.constant 0 : i32
    return %arg0, %c0_i32 : i32, i32
  }
  func.func @transform_1(%arg0: i32) -> (i32, i32) {
    %c0_i32 = arith.constant 0 : i32
    %c0_i32_0 = arith.constant 0 : i32
    %c0_i32_1 = arith.constant 0 : i32
    return %c0_i32, %c0_i32_0 : i32, i32
  }
  func.func @transform_2(%arg0: i32) -> (i32, i32) {
    %c0_i32 = arith.constant 0 : i32
    %c0_i32_0 = arith.constant 0 : i32
    %c0_i32_1 = arith.constant 0 : i32
    return %c0_i32, %c0_i32_0 : i32, i32
  }
  func.func @transform_3(%arg0: i32) -> (i32, i32) {
    %c0_i32 = arith.constant 0 : i32
    %c0_i32_0 = arith.constant 0 : i32
    %c0_i32_1 = arith.constant 0 : i32
    return %c0_i32, %c0_i32_0 : i32, i32
  }
  func.func @transform_4(%arg0: i32) -> (i32, i32) {
    %c0_i32 = arith.constant 0 : i32
    %c0_i32_0 = arith.constant 0 : i32
    %c0_i32_1 = arith.constant 0 : i32
    return %c0_i32, %c0_i32_0 : i32, i32
  }
  func.func @transform_5(%arg0: i32) -> (i32, i32) {
    %c0_i32 = arith.constant 0 : i32
    %c0_i32_0 = arith.constant 0 : i32
    %c0_i32_1 = arith.constant 0 : i32
    return %c0_i32, %c0_i32_0 : i32, i32
  }
  func.func @transform_6(%arg0: i32) -> (i32, i32) {
    %c0_i32 = arith.constant 0 : i32
    %c0_i32_0 = arith.constant 0 : i32
    %c0_i32_1 = arith.constant 0 : i32
    return %c0_i32, %c0_i32_0 : i32, i32
  }
  func.func @transform_7(%arg0: i32) -> (i32, i32, i32) {
    %c0_i32 = arith.constant 0 : i32
    %c0_i32_0 = arith.constant 0 : i32
    %c0_i32_1 = arith.constant 0 : i32
    return %arg0, %c0_i32, %c0_i32_0 : i32, i32, i32
  }
}

</mosaic_0001>

<bundles_post_ra>
// kernel: tpu_custom_call.1
= control target key start
LH: loop header
LB: loop body
LE: loop exit
PB: predicated region body
PF: predicated region fallthrough
CT: control target
= control target key end

     0   :  { %s1872_s0 = inlined_call_operand.vmem [shape: f32[128,10], index: 0, kind: input, shape index: {}]   ;;  %s1873_s1 = inlined_call_operand.vmem [shape: bf16[10,512], index: 1, kind: input, shape index: {}]   ;;  %s1874_s2 = inlined_call_operand.vmem [shape: bf16[1,512], index: 2, kind: input, shape index: {}]   ;;  %s1875_s3 = inlined_call_operand.hbm [shape: bf16[512,256], index: 3, kind: input, shape index: {}]   ;;  %s1876_s4 = inlined_call_operand.vmem [shape: bf16[1,256], index: 4, kind: input, shape index: {}]   ;;  %s1877_s5 = inlined_call_operand.vmem [shape: bf16[8,256], index: 5, kind: input, shape index: {}]   ;;  %s1878_s6 = inlined_call_operand.<no memory space> [shape: f32[1,1], index: 6, kind: input, shape index: {}]   ;;  %s1879_s7 = inlined_call_operand.hbm [shape: f32[1,1,128], index: 7, kind: output, shape index: {}]  }
   0x1   :  { %v12_v0 = vstv %s1878_s6 }
   0x2   :  { %13 = vst [vmem:[#allocation2] sm:$0x1] %v12_v0 }
   0x3   :  { %14 = vsyncpa [#allocation4], 0 }
   0x4   :  { %15 = vsyncpa [#allocation5], 0  ;;  %s1616_s26 = smov [#allocation3]   ;;  %s1568_s30 = scalar_lea.hbm %s1875_s3, 8192 }
   0x5   :  { %s27_s27 = sshll.u32 %s1616_s26, 4  ;;  %p1569_p0 = scmp.ne.s32.totalorder %s1875_s3, %s1568_s30  ;;  %s28_s27 = int_to_ptr.vmem [resolvable:$true] %s27_s27 }
   0x6   :  { %p1572_p1 = scmp.lt.u32.totalorder %s1568_s30, %s1875_s3 }
   0x8   :  { %p1574_p2 = pnand %p1572_p1, %p1569_p0 }
   0xa   :  { %1577 = shalt.err (!%p1574_p2)
}
   0xb   :  { %s1578_s6 = scalar_lea.vmem %s28_s27, 8192  ;;  %p1583_p4 = scmp.lt.s32.totalorder %s28_s27, %s28_s27 }
   0xc   :  { %p1579_p3 = scmp.ne.s32.totalorder %s28_s27, %s1578_s6  ;;  %p1584_p5 = scmp.lt.s32.totalorder %s1578_s6, %s1578_s6 }
   0xe   :  { %p1585_p6 = por %p1584_p5, %p1583_p4 }
  0x10   :  { %p1586_p7 = pnand %p1585_p6, %p1579_p3 }
  0x12   :  { %1589 = shalt.err (!%p1586_p7)
}
  0x13   :  { %s1617_s12 = smov 128   ;;  %s1618_s13 = smov 8  }
  0x14   :  { %33 = dma.hbm_to_vmem [thread:$0]  %s1875_s3, 8192, %s28_s27, [#allocation4], %s1617_s12, %s1617_s12, %s1618_s13  }
  0x15   :  { %1612 = dma.done.wait [#allocation4], 8192  }
  0x16   :  { %1613 = vsyncadd [#allocation4], 4294959104  ;;  %v1619_v1 = vmov 0   ;;  %vm114_vm0 = vcmask 1044480   ;;  %v45_v6 = vld [vmem:[%s1872_s0] sm:$0xff]  ;;  %v46_v7 = vld [vmem:[%s1872_s0 + $0x8] sm:$0xff] }
  0x17   :  { %159 = vmatprep.mubr.bf16.mxu0 %v1619_v1  ;;  %272 = vmatprep.mubr.bf16.mxu1 %v1619_v1  ;;  %v1460_v2 = vld [vmem:[%s1873_s1 + $0x4] ss:$16 sps:$4 sm:$0x1f]   ;;  %v1462_v3 = vld [vmem:[%s1873_s1 + $0xc] ss:$16 sps:$4 sm:$0x1f]   ;;  %v61_v10 = vpack.c.bf16 %v46_v7, %v45_v6 }
  0x18   :  { %1459 = vset.pattern.permute.xlu0 %v1619_v1  ;;  %1335 = vmatprep.subr.msk.bf16.mxu0 %vm114_vm0, %v1460_v2  ;;  %v1464_v4 = vld [vmem:[%s1873_s1] ss:$16 sps:$4 sm:$0x1f]   ;;  %v1465_v5 = vld [vmem:[%s1873_s1 + $0x8] ss:$16 sps:$4 sm:$0x1f]  }
  0x19   :  { %1344 = vmatprep.subr.msk.bf16.mxu1 %vm114_vm0, %v1462_v3  ;;  %v116_v8 = vsel %vm114_vm0, %v1464_v4, 0  ;;  %v122_v9 = vsel %vm114_vm0, %v1465_v5, 0  ;;  %vm89_vm1 = vcmask 80896   ;;  %v47_v11 = vld [vmem:[%s1872_s0 + $0x10] sm:$0xff]  ;;  %v48_v12 = vld [vmem:[%s1872_s0 + $0x18] sm:$0xff]  ;;  %v49_v22 = vld [vmem:[%s1872_s0 + $0x20] sm:$0xff] }
  0x1a   :  { %128 = vmatpush1.bf16.msra.mxu0 %v116_v8  ;;  %241 = vmatpush1.bf16.msra.mxu1 %v122_v9  ;;  %v1466_v13 = vld [vmem:[#allocation3] ss:$8 sps:$4 sm:$0xff]   ;;  %v1468_v14 = vld [vmem:[#allocation3 + $0x4] ss:$8 sps:$4 sm:$0xff]   ;;  %v62_v17 = vpack.c.bf16 %v48_v12, %v47_v11  ;;  %v1474_v18 = vld [vmem:[#allocation3 + $0x14] ss:$8 sps:$4 sm:$0xff]  }
  0x1b   :  { %v1469_v15 = vld [vmem:[#allocation3 + $0x100] ss:$8 sps:$4 sm:$0xff]   ;;  %v1471_v16 = vld [vmem:[#allocation3 + $0x104] ss:$8 sps:$4 sm:$0xff]   ;;  %919 = vmatprep.subr.bf16.mxu1 %v1468_v14  ;;  %v1477_v19 = vld [vmem:[#allocation3 + $0x114] ss:$8 sps:$4 sm:$0xff]  }
  0x1c   :  { %1032 = vmatprep.subr.bf16.mxu0 %v1471_v16  ;;  %v1472_v20 = vld [vmem:[#allocation3 + $0x10] ss:$8 sps:$4 sm:$0xff]   ;;  %v1480_v23 = vld [vmem:[#allocation3 + $0x24] ss:$8 sps:$4 sm:$0xff]   ;;  %v1478_v26 = vld [vmem:[#allocation3 + $0x20] ss:$8 sps:$4 sm:$0xff]  }
  0x1d   :  { %1336 = vmatmul.mubr.msk.bf16.vlgmr.msra.gmra.mrb[0].mxu0 %vm89_vm1, %v61_v10  ;;  %1345 = vmatmul.mubr.msk.bf16.vlgmr.msra.gmra.mrb[0].mxu1 %vm89_vm1, %v61_v10  ;;  %v1475_v21 = vld [vmem:[#allocation3 + $0x110] ss:$8 sps:$4 sm:$0xff]   ;;  %v1483_v24 = vld [vmem:[#allocation3 + $0x124] ss:$8 sps:$4 sm:$0xff]   ;;  %v1481_v27 = vld [vmem:[#allocation3 + $0x120] ss:$8 sps:$4 sm:$0xff]  }
  0x1e   :  { %169 = vmatprep.mubr.bf16.mxu0 %v1619_v1  ;;  %282 = vmatprep.mubr.bf16.mxu1 %v1619_v1  ;;  %v50_v25 = vld [vmem:[%s1872_s0 + $0x28] sm:$0xff]  ;;  %v1486_v28 = vld [vmem:[#allocation3 + $0x34] ss:$8 sps:$4 sm:$0xff]   ;;  %v1484_v31 = vld [vmem:[#allocation3 + $0x30] ss:$8 sps:$4 sm:$0xff]  }
  0x1f   :  { %920 = vmatpush1.bf16.msra.mxu1 %v1466_v13  ;;  %1033 = vmatpush1.bf16.msra.mxu0 %v1469_v15  ;;  %v1489_v29 = vld [vmem:[#allocation3 + $0x134] ss:$8 sps:$4 sm:$0xff]   ;;  %v63_v30 = vpack.c.bf16 %v50_v25, %v49_v22  ;;  %v1487_v32 = vld [vmem:[#allocation3 + $0x130] ss:$8 sps:$4 sm:$0xff]   ;;  %v1492_v33 = vld [vmem:[#allocation3 + $0x44] ss:$8 sps:$4 sm:$0xff]  }
  0x20   :  { %921 = vmatprep.subr.bf16.mxu1 %v1474_v18  ;;  %1034 = vmatprep.subr.bf16.mxu0 %v1477_v19  ;;  %v1495_v34 = vld [vmem:[#allocation3 + $0x144] ss:$8 sps:$4 sm:$0xff]   ;;  %v52_v36 = vld [vmem:[%s1872_s0 + $0x38] sm:$0xff]  ;;  %v1490_v37 = vld [vmem:[#allocation3 + $0x40] ss:$8 sps:$4 sm:$0xff]  }
  0x21   :  { %v51_v35 = vld [vmem:[%s1872_s0 + $0x30] sm:$0xff]  ;;  %v1493_v38 = vld [vmem:[#allocation3 + $0x140] ss:$8 sps:$4 sm:$0xff]   ;;  %v56_v58 = vld [vmem:[%s1872_s0 + $0x58] sm:$0xff] }
  0x22   :  { %v1498_v39 = vld [vmem:[#allocation3 + $0x54] ss:$8 sps:$4 sm:$0xff]   ;;  %v64_v41 = vpack.c.bf16 %v52_v36, %v51_v35  ;;  %v1496_v42 = vld [vmem:[#allocation3 + $0x50] ss:$8 sps:$4 sm:$0xff]   ;;  %v1504_v44 = vld [vmem:[#allocation3 + $0x64] ss:$8 sps:$4 sm:$0xff]  }
  0x23   :  { %922 = vmatpush1.bf16.msra.mxu1 %v1472_v20  ;;  %1035 = vmatpush1.bf16.msra.mxu0 %v1475_v21  ;;  %v1501_v40 = vld [vmem:[#allocation3 + $0x154] ss:$8 sps:$4 sm:$0xff]   ;;  %v1499_v43 = vld [vmem:[#allocation3 + $0x150] ss:$8 sps:$4 sm:$0xff]   ;;  %v1507_v45 = vld [vmem:[#allocation3 + $0x164] ss:$8 sps:$4 sm:$0xff]  }
  0x24   :  { %923 = vmatprep.subr.bf16.mxu1 %v1480_v23  ;;  %1036 = vmatprep.subr.bf16.mxu0 %v1483_v24  ;;  %v53_v46 = vld [vmem:[%s1872_s0 + $0x40] sm:$0xff]  ;;  %v54_v47 = vld [vmem:[%s1872_s0 + $0x48] sm:$0xff]  ;;  %v1508_v53 = vld [vmem:[#allocation3 + $0x70] ss:$8 sps:$4 sm:$0xff]  }
  0x25   :  { %1337 = vmatmul.mubr.msk.bf16.gmra.mrb[4].mxu0 %vm89_vm1, %v62_v17  ;;  %1346 = vmatmul.mubr.msk.bf16.gmra.mrb[4].mxu1 %vm89_vm1, %v62_v17  ;;  %v1502_v48 = vld [vmem:[#allocation3 + $0x60] ss:$8 sps:$4 sm:$0xff]   ;;  %v1510_v50 = vld [vmem:[#allocation3 + $0x74] ss:$8 sps:$4 sm:$0xff]   ;;  %v65_v52 = vpack.c.bf16 %v54_v47, %v53_v46  ;;  %v1511_v54 = vld [vmem:[#allocation3 + $0x170] ss:$8 sps:$4 sm:$0xff]  }
  0x26   :  { %179 = vmatprep.mubr.bf16.mxu0 %v1619_v1  ;;  %292 = vmatprep.mubr.bf16.mxu1 %v1619_v1  ;;  %v1505_v49 = vld [vmem:[#allocation3 + $0x160] ss:$8 sps:$4 sm:$0xff]   ;;  %v1513_v51 = vld [vmem:[#allocation3 + $0x174] ss:$8 sps:$4 sm:$0xff]   ;;  %v1516_v55 = vld [vmem:[#allocation3 + $0x84] ss:$8 sps:$4 sm:$0xff]  }
  0x27   :  { %924 = vmatpush1.bf16.msra.mxu1 %v1478_v26  ;;  %1037 = vmatpush1.bf16.msra.mxu0 %v1481_v27  ;;  %v55_v56 = vld [vmem:[%s1872_s0 + $0x50] sm:$0xff]  ;;  %v1514_v59 = vld [vmem:[#allocation3 + $0x80] ss:$8 sps:$4 sm:$0xff]   ;;  %v60_v17 = vld [vmem:[%s1872_s0 + $0x78] sm:$0xff] }
  0x28   :  { %925 = vmatprep.subr.bf16.mxu1 %v1486_v28  ;;  %1038 = vmatprep.subr.bf16.mxu0 %v1489_v29  ;;  %v1519_v57 = vld [vmem:[#allocation3 + $0x184] ss:$8 sps:$4 sm:$0xff]   ;;  %v1517_v60 = vld [vmem:[#allocation3 + $0x180] ss:$8 sps:$4 sm:$0xff]   ;;  %v1522_v61 = vld [vmem:[#allocation3 + $0x94] ss:$8 sps:$4 sm:$0xff]   ;;  %v66_v63 = vpack.c.bf16 %v56_v58, %v55_v56 }
  0x29   :  { %v1525_v62 = vld [vmem:[#allocation3 + $0x194] ss:$8 sps:$4 sm:$0xff]   ;;  %v1520_v0 = vld [vmem:[#allocation3 + $0x90] ss:$8 sps:$4 sm:$0xff]   ;;  %v1528_v3 = vld [vmem:[#allocation3 + $0xa4] ss:$8 sps:$4 sm:$0xff]  }
  0x2a   :  { %v1523_v2 = vld [vmem:[#allocation3 + $0x190] ss:$8 sps:$4 sm:$0xff]   ;;  %v1531_v4 = vld [vmem:[#allocation3 + $0x1a4] ss:$8 sps:$4 sm:$0xff]   ;;  %v1526_v7 = vld [vmem:[#allocation3 + $0xa0] ss:$8 sps:$4 sm:$0xff]  }
  0x2b   :  { %926 = vmatpush1.bf16.msra.mxu1 %v1484_v31  ;;  %1039 = vmatpush1.bf16.msra.mxu0 %v1487_v32  ;;  %v57_v5 = vld [vmem:[%s1872_s0 + $0x60] sm:$0xff]  ;;  %v58_v6 = vld [vmem:[%s1872_s0 + $0x68] sm:$0xff]  ;;  %v1532_v12 = vld [vmem:[#allocation3 + $0xb0] ss:$8 sps:$4 sm:$0xff]   ;;  %v1620_v32 = vmov 1966171168  }
  0x2c   :  { %927 = vmatprep.subr.bf16.mxu1 %v1492_v33  ;;  %1040 = vmatprep.subr.bf16.mxu0 %v1495_v34  ;;  %v1529_v8 = vld [vmem:[#allocation3 + $0x1a0] ss:$8 sps:$4 sm:$0xff]   ;;  %v1534_v9 = vld [vmem:[#allocation3 + $0xb4] ss:$8 sps:$4 sm:$0xff]   ;;  %v67_v11 = vpack.c.bf16 %v58_v6, %v57_v5  ;;  %v1535_v13 = vld [vmem:[#allocation3 + $0x1b0] ss:$8 sps:$4 sm:$0xff]   ;;  %v396_v33 = vunpack.c.l.s4 %v1620_v32  ;;  %v398_v34 = vlaneseq }
  0x2d   :  { %1338 = vmatmul.mubr.msk.bf16.gmra.mrb[8].mxu0 %vm89_vm1, %v63_v30  ;;  %1347 = vmatmul.mubr.msk.bf16.gmra.mrb[8].mxu1 %vm89_vm1, %v63_v30  ;;  %v1537_v10 = vld [vmem:[#allocation3 + $0x1b4] ss:$8 sps:$4 sm:$0xff]   ;;  %v1540_v14 = vld [vmem:[#allocation3 + $0xc4] ss:$8 sps:$4 sm:$0xff]   ;;  %v1538_v18 = vld [vmem:[#allocation3 + $0xc0] ss:$8 sps:$4 sm:$0xff]  }
  0x2e   :  { %189 = vmatprep.mubr.bf16.mxu0 %v1619_v1  ;;  %302 = vmatprep.mubr.bf16.mxu1 %v1619_v1  ;;  %v1543_v15 = vld [vmem:[#allocation3 + $0x1c4] ss:$8 sps:$4 sm:$0xff]   ;;  %v1541_v19 = vld [vmem:[#allocation3 + $0x1c0] ss:$8 sps:$4 sm:$0xff]   ;;  %v1549_v21 = vld [vmem:[#allocation3 + $0x1d4] ss:$8 sps:$4 sm:$0xff]   ;;  %v397_v35 = vunpack.c.0.s8 %v396_v33 }
  0x2f   :  { %928 = vmatpush1.bf16.msra.mxu1 %v1490_v37  ;;  %1041 = vmatpush1.bf16.msra.mxu0 %v1493_v38  ;;  %v59_v16 = vld [vmem:[%s1872_s0 + $0x70] sm:$0xff]  ;;  %v1550_v26 = vld [vmem:[#allocation3 + $0xe0] ss:$8 sps:$4 sm:$0xff]   ;;  %v399_v36 = vshrl.u32 %v398_v34, 7 }
  0x30   :  { %929 = vmatprep.subr.bf16.mxu1 %v1498_v39  ;;  %1042 = vmatprep.subr.bf16.mxu0 %v1501_v40  ;;  %v68_v20 = vpack.c.bf16 %v60_v17, %v59_v16  ;;  %v1544_v22 = vld [vmem:[#allocation3 + $0xd0] ss:$8 sps:$4 sm:$0xff]   ;;  %v1552_v24 = vld [vmem:[#allocation3 + $0xe4] ss:$8 sps:$4 sm:$0xff]   ;;  %v1553_v27 = vld [vmem:[#allocation3 + $0x1e0] ss:$8 sps:$4 sm:$0xff]  }
  0x31   :  { %v1547_v23 = vld [vmem:[#allocation3 + $0x1d0] ss:$8 sps:$4 sm:$0xff]   ;;  %v1555_v25 = vld [vmem:[#allocation3 + $0x1e4] ss:$8 sps:$4 sm:$0xff]   ;;  %v1558_v28 = vld [vmem:[#allocation3 + $0xf4] ss:$8 sps:$4 sm:$0xff]   ;;  %v1773_v38 = vsub.s32 %v397_v35, %v399_v36 }
  0x32   :  { %v1561_v29 = vld [vmem:[#allocation3 + $0x1f4] ss:$8 sps:$4 sm:$0xff]   ;;  %v1556_v30 = vld [vmem:[#allocation3 + $0xf0] ss:$8 sps:$4 sm:$0xff]  }
  0x33   :  { %930 = vmatpush1.bf16.msra.mxu1 %v1496_v42  ;;  %1043 = vmatpush1.bf16.msra.mxu0 %v1499_v43  ;;  %v1559_v31 = vld [vmem:[#allocation3 + $0x1f0] ss:$8 sps:$4 sm:$0xff]   ;;  %v1353_v37 = vld.sshfl [vmem:[%s1874_s2] sm:$0x33 pattern:$0x75316420] }
  0x34   :  { %931 = vmatprep.subr.bf16.mxu1 %v1504_v44  ;;  %1044 = vmatprep.subr.bf16.mxu0 %v1507_v45  ;;  %v394_v39 = vcombine.high %v1353_v37, %v1353_v37  ;;  %v401_v40 = vrot.slane %v1353_v37, %v1773_v38  ;;  %v1777_v45 = vsub.s32 0, %v399_v36 }
  0x35   :  { %1339 = vmatmul.mubr.msk.bf16.gmra.mrb[12].mxu0 %vm89_vm1, %v64_v41  ;;  %1348 = vmatmul.mubr.msk.bf16.gmra.mrb[12].mxu1 %vm89_vm1, %v64_v41 }
  0x36   :  { %199 = vmatprep.mubr.bf16.mxu0 %v1619_v1  ;;  %312 = vmatprep.mubr.bf16.mxu1 %v1619_v1  ;;  %v408_v41 = vrot.slane %v394_v39, %v1773_v38  ;;  %v409_v42 = vcombine.high %v401_v40, %v401_v40  ;;  %v412_v44 = vpack.i.b16 %v401_v40, %v401_v40 }
  0x37   :  { %932 = vmatpush1.bf16.msra.mxu1 %v1502_v48  ;;  %1045 = vmatpush1.bf16.msra.mxu0 %v1505_v49 }
  0x38   :  { %933 = vmatprep.subr.bf16.mxu1 %v1510_v50  ;;  %1046 = vmatprep.subr.bf16.mxu0 %v1513_v51  ;;  %v410_v43 = vcombine.high %v408_v41, %v408_v41  ;;  %v426_v46 = vpack.i.b16 %v409_v42, %v409_v42  ;;  %v419_v47 = vpack.i.b16 %v408_v41, %v408_v41 }
  0x3a   :  { %v433_v48 = vpack.i.b16 %v410_v43, %v410_v43 }
  0x3b   :  { %934 = vmatpush1.bf16.msra.mxu1 %v1508_v53  ;;  %1047 = vmatpush1.bf16.msra.mxu0 %v1511_v54  ;;  %v1780_v53 = vrot.slane %v412_v44, %v1777_v45  ;;  %v1783_v54 = vrot.slane %v426_v46, %v1777_v45 }
  0x3c   :  { %935 = vmatprep.subr.bf16.mxu1 %v1516_v55  ;;  %1048 = vmatprep.subr.bf16.mxu0 %v1519_v57  ;;  %v1786_v57 = vrot.slane %v419_v47, %v1777_v45  ;;  %v1789_v58 = vrot.slane %v433_v48, %v1777_v45 }
  0x3d   :  { %1340 = vmatmul.mubr.msk.bf16.gmra.mrb[16].mxu0 %vm89_vm1, %v65_v52  ;;  %1349 = vmatmul.mubr.msk.bf16.gmra.mrb[16].mxu1 %vm89_vm1, %v65_v52 }
  0x3e   :  { %209 = vmatprep.mubr.bf16.mxu0 %v1619_v1  ;;  %322 = vmatprep.mubr.bf16.mxu1 %v1619_v1 }
  0x3f   :  { %936 = vmatpush1.bf16.msra.mxu1 %v1514_v59  ;;  %1049 = vmatpush1.bf16.msra.mxu0 %v1517_v60 }
  0x40   :  { %937 = vmatprep.subr.bf16.mxu1 %v1522_v61  ;;  %1050 = vmatprep.subr.bf16.mxu0 %v1525_v62 }
  0x43   :  { %938 = vmatpush1.bf16.msra.mxu1 %v1520_v0  ;;  %1051 = vmatpush1.bf16.msra.mxu0 %v1523_v2 }
  0x44   :  { %939 = vmatprep.subr.bf16.mxu1 %v1528_v3  ;;  %1052 = vmatprep.subr.bf16.mxu0 %v1531_v4 }
  0x45   :  { %1341 = vmatmul.mubr.msk.bf16.gmra.mrb[20].mxu0 %vm89_vm1, %v66_v63  ;;  %1350 = vmatmul.mubr.msk.bf16.gmra.mrb[20].mxu1 %vm89_vm1, %v66_v63 }
  0x46   :  { %219 = vmatprep.mubr.bf16.mxu0 %v1619_v1  ;;  %332 = vmatprep.mubr.bf16.mxu1 %v1619_v1 }
  0x47   :  { %940 = vmatpush1.bf16.msra.mxu1 %v1526_v7  ;;  %1053 = vmatpush1.bf16.msra.mxu0 %v1529_v8 }
  0x48   :  { %941 = vmatprep.subr.bf16.mxu1 %v1534_v9  ;;  %1054 = vmatprep.subr.bf16.mxu0 %v1537_v10 }
  0x4b   :  { %942 = vmatpush1.bf16.msra.mxu1 %v1532_v12  ;;  %1055 = vmatpush1.bf16.msra.mxu0 %v1535_v13 }
  0x4c   :  { %943 = vmatprep.subr.bf16.mxu1 %v1540_v14  ;;  %1056 = vmatprep.subr.bf16.mxu0 %v1543_v15 }
  0x4d   :  { %1342 = vmatmul.mubr.msk.bf16.gmra.mrb[24].mxu0 %vm89_vm1, %v67_v11  ;;  %1351 = vmatmul.mubr.msk.bf16.gmra.mrb[24].mxu1 %vm89_vm1, %v67_v11 }
  0x4e   :  { %229 = vmatprep.mubr.bf16.mxu0 %v1619_v1  ;;  %342 = vmatprep.mubr.bf16.mxu1 %v1619_v1  ;;  %v1546_v1 = vld [vmem:[#allocation3 + $0xd4] ss:$8 sps:$4 sm:$0xff]  }
  0x4f   :  { %944 = vmatpush1.bf16.msra.mxu1 %v1538_v18  ;;  %1057 = vmatpush1.bf16.msra.mxu0 %v1541_v19 }
  0x50   :  { %945 = vmatprep.subr.bf16.mxu1 %v1546_v1  ;;  %1058 = vmatprep.subr.bf16.mxu0 %v1549_v21 }
  0x53   :  { %946 = vmatpush1.bf16.msra.mxu1 %v1544_v22  ;;  %1059 = vmatpush1.bf16.msra.mxu0 %v1547_v23 }
  0x54   :  { %947 = vmatprep.subr.bf16.mxu1 %v1552_v24  ;;  %1060 = vmatprep.subr.bf16.mxu0 %v1555_v25 }
  0x55   :  { %1343 = vmatmul.mubr.msk.bf16.gmra.mrb[28].mxu0 %vm89_vm1, %v68_v20  ;;  %1352 = vmatmul.mubr.msk.bf16.gmra.mrb[28].mxu1 %vm89_vm1, %v68_v20 }
  0x57   :  { %948 = vmatpush1.bf16.msra.mxu1 %v1550_v26  ;;  %1061 = vmatpush1.bf16.msra.mxu0 %v1553_v27 }
  0x58   :  { %949 = vmatprep.subr.bf16.mxu1 %v1558_v28  ;;  %1062 = vmatprep.subr.bf16.mxu0 %v1561_v29 }
  0x5b   :  { %950 = vmatpush1.bf16.msra.mxu1 %v1556_v30  ;;  %1063 = vmatpush1.bf16.msra.mxu0 %v1559_v31 }
  0xf0   :  { %v161_v49 = vpop.f32.mrb[0].mxu0  ;;  %v274_v50 = vpop.f32.mrb[0].mxu1 }
  0xf1   :  { %v163_v51 = vpop.f32.mrb[1].mxu0  ;;  %v276_v52 = vpop.f32.mrb[1].mxu1 }
  0xf2   :  { %v165_v55 = vpop.f32.mrb[2].mxu0  ;;  %v278_v56 = vpop.f32.mrb[2].mxu1 }
  0xf3   :  { %v353_v59 = vpack.c.bf16 %v165_v55, %v161_v49  ;;  %v355_v60 = vpack.c.bf16 %v278_v56, %v274_v50  ;;  %v167_v61 = vpop.f32.mrb[3].mxu0  ;;  %v280_v62 = vpop.f32.mrb[3].mxu1 }
  0xf4   :  { %v354_v63 = vpack.c.bf16 %v167_v61, %v163_v51  ;;  %v356_v0 = vpack.c.bf16 %v280_v62, %v276_v52 }
  0xf5   :  { %v439_v2 = vadd.bf16 %v1780_v53, %v353_v59  ;;  %v441_v3 = vadd.bf16 %v1783_v54, %v355_v60 }
  0xf6   :  { %v440_v4 = vadd.bf16 %v1786_v57, %v354_v63  ;;  %v442_v5 = vadd.bf16 %v1789_v58, %v356_v0 }
  0xf7   :  { %v471_v6 = vmul.bf16 1045249613, %v439_v2  ;;  %v473_v7 = vmul.bf16 1045249613, %v441_v3 }
  0xf8   :  { %v472_v8 = vmul.bf16 1045249613, %v440_v4  ;;  %v474_v9 = vmul.bf16 1045249613, %v442_v5  ;;  %v171_v10 = vpop.f32.mrb[4].mxu0  ;;  %v284_v11 = vpop.f32.mrb[4].mxu1 }
  0xf9   :  { %v173_v12 = vpop.f32.mrb[5].mxu0  ;;  %v286_v13 = vpop.f32.mrb[5].mxu1  ;;  %v503_v18 = vmax.bf16 %v471_v6, %v439_v2  ;;  %v505_v19 = vmax.bf16 %v473_v7, %v441_v3 }
  0xfa   :  { %v175_v14 = vpop.f32.mrb[6].mxu0  ;;  %v288_v15 = vpop.f32.mrb[6].mxu1  ;;  %v504_v16 = vmax.bf16 %v472_v8, %v440_v4  ;;  %v506_v17 = vmax.bf16 %v474_v9, %v442_v5 }
  0xfb   :  { %v357_v20 = vpack.c.bf16 %v175_v14, %v171_v10  ;;  %v359_v1 = vpack.c.bf16 %v288_v15, %v284_v11  ;;  %v177_v21 = vpop.f32.mrb[7].mxu0  ;;  %v290_v22 = vpop.f32.mrb[7].mxu1 }
  0xfc   :  { %v358_v23 = vpack.c.bf16 %v177_v21, %v173_v12  ;;  %v360_v24 = vpack.c.bf16 %v290_v22, %v286_v13  ;;  %951 = vmatprep.mubr.bf16.mxu1 %v504_v16  ;;  %1064 = vmatprep.mubr.bf16.mxu0 %v506_v17 }
  0xfd   :  { %v443_v25 = vadd.bf16 %v1780_v53, %v357_v20  ;;  %v445_v26 = vadd.bf16 %v1783_v54, %v359_v1  ;;  %952 = vmatmul.mubr.bf16.vlgmr.msra.gmra.mrb[32].mxu1 %v503_v18  ;;  %1065 = vmatmul.mubr.bf16.vlgmr.msra.gmra.mrb[32].mxu0 %v505_v19 }
  0xfe   :  { %v444_v27 = vadd.bf16 %v1786_v57, %v358_v23  ;;  %v446_v28 = vadd.bf16 %v1789_v58, %v360_v24 }
  0xff   :  { %v475_v29 = vmul.bf16 1045249613, %v443_v25  ;;  %v477_v30 = vmul.bf16 1045249613, %v445_v26 }
 0x100   :  { %v476_v31 = vmul.bf16 1045249613, %v444_v27  ;;  %v478_v32 = vmul.bf16 1045249613, %v446_v28  ;;  %v181_v33 = vpop.f32.mrb[8].mxu0  ;;  %v294_v34 = vpop.f32.mrb[8].mxu1 }
 0x101   :  { %v183_v35 = vpop.f32.mrb[9].mxu0  ;;  %v296_v36 = vpop.f32.mrb[9].mxu1  ;;  %v507_v47 = vmax.bf16 %v475_v29, %v443_v25  ;;  %v509_v48 = vmax.bf16 %v477_v30, %v445_v26 }
 0x102   :  { %v185_v37 = vpop.f32.mrb[10].mxu0  ;;  %v298_v39 = vpop.f32.mrb[10].mxu1  ;;  %v508_v40 = vmax.bf16 %v476_v31, %v444_v27  ;;  %v510_v41 = vmax.bf16 %v478_v32, %v446_v28 }
 0x103   :  { %v361_v42 = vpack.c.bf16 %v185_v37, %v181_v33  ;;  %v363_v43 = vpack.c.bf16 %v298_v39, %v294_v34  ;;  %v187_v44 = vpop.f32.mrb[11].mxu0  ;;  %v300_v46 = vpop.f32.mrb[11].mxu1 }
 0x104   :  { %v362_v49 = vpack.c.bf16 %v187_v44, %v183_v35  ;;  %v364_v50 = vpack.c.bf16 %v300_v46, %v296_v36  ;;  %961 = vmatprep.mubr.bf16.mxu1 %v508_v40  ;;  %1074 = vmatprep.mubr.bf16.mxu0 %v510_v41 }
 0x105   :  { %v447_v51 = vadd.bf16 %v1780_v53, %v361_v42  ;;  %v449_v52 = vadd.bf16 %v1783_v54, %v363_v43  ;;  %962 = vmatmul.mubr.bf16.gmra.mrb[36].mxu1 %v507_v47  ;;  %1075 = vmatmul.mubr.bf16.gmra.mrb[36].mxu0 %v509_v48 }
 0x106   :  { %v448_v55 = vadd.bf16 %v1786_v57, %v362_v49  ;;  %v450_v56 = vadd.bf16 %v1789_v58, %v364_v50 }
 0x107   :  { %v479_v59 = vmul.bf16 1045249613, %v447_v51  ;;  %v481_v60 = vmul.bf16 1045249613, %v449_v52 }
 0x108   :  { %v480_v61 = vmul.bf16 1045249613, %v448_v55  ;;  %v482_v62 = vmul.bf16 1045249613, %v450_v56  ;;  %v191_v63 = vpop.f32.mrb[12].mxu0  ;;  %v304_v0 = vpop.f32.mrb[12].mxu1 }
 0x109   :  { %v193_v2 = vpop.f32.mrb[13].mxu0  ;;  %v306_v3 = vpop.f32.mrb[13].mxu1  ;;  %v511_v12 = vmax.bf16 %v479_v59, %v447_v51  ;;  %v513_v13 = vmax.bf16 %v481_v60, %v449_v52 }
 0x10a   :  { %v195_v4 = vpop.f32.mrb[14].mxu0  ;;  %v308_v5 = vpop.f32.mrb[14].mxu1  ;;  %v512_v6 = vmax.bf16 %v480_v61, %v448_v55  ;;  %v514_v7 = vmax.bf16 %v482_v62, %v450_v56 }
 0x10b   :  { %v365_v8 = vpack.c.bf16 %v195_v4, %v191_v63  ;;  %v367_v9 = vpack.c.bf16 %v308_v5, %v304_v0  ;;  %v197_v10 = vpop.f32.mrb[15].mxu0  ;;  %v310_v11 = vpop.f32.mrb[15].mxu1 }
 0x10c   :  { %v366_v14 = vpack.c.bf16 %v197_v10, %v193_v2  ;;  %v368_v15 = vpack.c.bf16 %v310_v11, %v306_v3  ;;  %971 = vmatprep.mubr.bf16.mxu1 %v512_v6  ;;  %1084 = vmatprep.mubr.bf16.mxu0 %v514_v7 }
 0x10d   :  { %v451_v16 = vadd.bf16 %v1780_v53, %v365_v8  ;;  %v453_v17 = vadd.bf16 %v1783_v54, %v367_v9  ;;  %972 = vmatmul.mubr.bf16.gmra.mrb[40].mxu1 %v511_v12  ;;  %1085 = vmatmul.mubr.bf16.gmra.mrb[40].mxu0 %v513_v13 }
 0x10e   :  { %v452_v18 = vadd.bf16 %v1786_v57, %v366_v14  ;;  %v454_v19 = vadd.bf16 %v1789_v58, %v368_v15 }
 0x10f   :  { %v483_v20 = vmul.bf16 1045249613, %v451_v16  ;;  %v485_v1 = vmul.bf16 1045249613, %v453_v17 }
 0x110   :  { %v484_v21 = vmul.bf16 1045249613, %v452_v18  ;;  %v486_v22 = vmul.bf16 1045249613, %v454_v19  ;;  %v201_v23 = vpop.f32.mrb[16].mxu0  ;;  %v314_v24 = vpop.f32.mrb[16].mxu1 }
 0x111   :  { %v203_v25 = vpop.f32.mrb[17].mxu0  ;;  %v316_v26 = vpop.f32.mrb[17].mxu1  ;;  %v515_v35 = vmax.bf16 %v483_v20, %v451_v16  ;;  %v517_v36 = vmax.bf16 %v485_v1, %v453_v17 }
 0x112   :  { %v205_v27 = vpop.f32.mrb[18].mxu0  ;;  %v318_v28 = vpop.f32.mrb[18].mxu1  ;;  %v516_v29 = vmax.bf16 %v484_v21, %v452_v18  ;;  %v518_v30 = vmax.bf16 %v486_v22, %v454_v19 }
 0x113   :  { %v369_v31 = vpack.c.bf16 %v205_v27, %v201_v23  ;;  %v371_v32 = vpack.c.bf16 %v318_v28, %v314_v24  ;;  %v207_v33 = vpop.f32.mrb[19].mxu0  ;;  %v320_v34 = vpop.f32.mrb[19].mxu1 }
 0x114   :  { %v370_v37 = vpack.c.bf16 %v207_v33, %v203_v25  ;;  %v372_v39 = vpack.c.bf16 %v320_v34, %v316_v26  ;;  %981 = vmatprep.mubr.bf16.mxu1 %v516_v29  ;;  %1094 = vmatprep.mubr.bf16.mxu0 %v518_v30 }
 0x115   :  { %v455_v40 = vadd.bf16 %v1780_v53, %v369_v31  ;;  %v457_v41 = vadd.bf16 %v1783_v54, %v371_v32  ;;  %982 = vmatmul.mubr.bf16.gmra.mrb[44].mxu1 %v515_v35  ;;  %1095 = vmatmul.mubr.bf16.gmra.mrb[44].mxu0 %v517_v36 }
 0x116   :  { %v456_v42 = vadd.bf16 %v1786_v57, %v370_v37  ;;  %v458_v43 = vadd.bf16 %v1789_v58, %v372_v39 }
 0x117   :  { %v487_v44 = vmul.bf16 1045249613, %v455_v40  ;;  %v489_v46 = vmul.bf16 1045249613, %v457_v41 }
 0x118   :  { %v488_v47 = vmul.bf16 1045249613, %v456_v42  ;;  %v490_v48 = vmul.bf16 1045249613, %v458_v43  ;;  %v211_v49 = vpop.f32.mrb[20].mxu0  ;;  %v324_v50 = vpop.f32.mrb[20].mxu1 }
 0x119   :  { %v213_v51 = vpop.f32.mrb[21].mxu0  ;;  %v326_v52 = vpop.f32.mrb[21].mxu1  ;;  %v519_v2 = vmax.bf16 %v487_v44, %v455_v40  ;;  %v521_v3 = vmax.bf16 %v489_v46, %v457_v41 }
 0x11a   :  { %v215_v55 = vpop.f32.mrb[22].mxu0  ;;  %v328_v56 = vpop.f32.mrb[22].mxu1  ;;  %v520_v59 = vmax.bf16 %v488_v47, %v456_v42  ;;  %v522_v60 = vmax.bf16 %v490_v48, %v458_v43 }
 0x11b   :  { %v373_v61 = vpack.c.bf16 %v215_v55, %v211_v49  ;;  %v375_v62 = vpack.c.bf16 %v328_v56, %v324_v50  ;;  %v217_v63 = vpop.f32.mrb[23].mxu0  ;;  %v330_v0 = vpop.f32.mrb[23].mxu1 }
 0x11c   :  { %v374_v4 = vpack.c.bf16 %v217_v63, %v213_v51  ;;  %v376_v5 = vpack.c.bf16 %v330_v0, %v326_v52  ;;  %991 = vmatprep.mubr.bf16.mxu1 %v520_v59  ;;  %1104 = vmatprep.mubr.bf16.mxu0 %v522_v60 }
 0x11d   :  { %v459_v6 = vadd.bf16 %v1780_v53, %v373_v61  ;;  %v461_v7 = vadd.bf16 %v1783_v54, %v375_v62  ;;  %992 = vmatmul.mubr.bf16.gmra.mrb[48].mxu1 %v519_v2  ;;  %1105 = vmatmul.mubr.bf16.gmra.mrb[48].mxu0 %v521_v3 }
 0x11e   :  { %v460_v8 = vadd.bf16 %v1786_v57, %v374_v4  ;;  %v462_v9 = vadd.bf16 %v1789_v58, %v376_v5 }
 0x11f   :  { %v491_v10 = vmul.bf16 1045249613, %v459_v6  ;;  %v493_v11 = vmul.bf16 1045249613, %v461_v7 }
 0x120   :  { %v492_v12 = vmul.bf16 1045249613, %v460_v8  ;;  %v494_v13 = vmul.bf16 1045249613, %v462_v9  ;;  %v221_v14 = vpop.f32.mrb[24].mxu0  ;;  %v334_v15 = vpop.f32.mrb[24].mxu1 }
 0x121   :  { %v223_v16 = vpop.f32.mrb[25].mxu0  ;;  %v336_v17 = vpop.f32.mrb[25].mxu1  ;;  %v523_v25 = vmax.bf16 %v491_v10, %v459_v6  ;;  %v525_v26 = vmax.bf16 %v493_v11, %v461_v7 }
 0x122   :  { %v225_v18 = vpop.f32.mrb[26].mxu0  ;;  %v338_v19 = vpop.f32.mrb[26].mxu1  ;;  %v524_v20 = vmax.bf16 %v492_v12, %v460_v8  ;;  %v526_v1 = vmax.bf16 %v494_v13, %v462_v9 }
 0x123   :  { %v377_v21 = vpack.c.bf16 %v225_v18, %v221_v14  ;;  %v379_v22 = vpack.c.bf16 %v338_v19, %v334_v15  ;;  %v227_v23 = vpop.f32.mrb[27].mxu0  ;;  %v340_v24 = vpop.f32.mrb[27].mxu1 }
 0x124   :  { %v378_v27 = vpack.c.bf16 %v227_v23, %v223_v16  ;;  %v380_v28 = vpack.c.bf16 %v340_v24, %v336_v17  ;;  %1001 = vmatprep.mubr.bf16.mxu1 %v524_v20  ;;  %1114 = vmatprep.mubr.bf16.mxu0 %v526_v1 }
 0x125   :  { %v463_v29 = vadd.bf16 %v1780_v53, %v377_v21  ;;  %v465_v30 = vadd.bf16 %v1783_v54, %v379_v22  ;;  %1002 = vmatmul.mubr.bf16.gmra.mrb[52].mxu1 %v523_v25  ;;  %1115 = vmatmul.mubr.bf16.gmra.mrb[52].mxu0 %v525_v26 }
 0x126   :  { %v464_v31 = vadd.bf16 %v1786_v57, %v378_v27  ;;  %v466_v32 = vadd.bf16 %v1789_v58, %v380_v28 }
 0x127   :  { %v495_v33 = vmul.bf16 1045249613, %v463_v29  ;;  %v497_v34 = vmul.bf16 1045249613, %v465_v30 }
 0x128   :  { %v496_v35 = vmul.bf16 1045249613, %v464_v31  ;;  %v498_v36 = vmul.bf16 1045249613, %v466_v32  ;;  %v231_v37 = vpop.f32.mrb[28].mxu0  ;;  %v344_v39 = vpop.f32.mrb[28].mxu1 }
 0x129   :  { %v233_v40 = vpop.f32.mrb[29].mxu0  ;;  %v346_v41 = vpop.f32.mrb[29].mxu1  ;;  %v527_v51 = vmax.bf16 %v495_v33, %v463_v29  ;;  %v529_v52 = vmax.bf16 %v497_v34, %v465_v30 }
 0x12a   :  { %v235_v42 = vpop.f32.mrb[30].mxu0  ;;  %v348_v43 = vpop.f32.mrb[30].mxu1  ;;  %v528_v44 = vmax.bf16 %v496_v35, %v464_v31  ;;  %v530_v46 = vmax.bf16 %v498_v36, %v466_v32 }
 0x12b   :  { %v381_v47 = vpack.c.bf16 %v235_v42, %v231_v37  ;;  %v383_v48 = vpack.c.bf16 %v348_v43, %v344_v39  ;;  %v237_v49 = vpop.f32.mrb[31].mxu0  ;;  %v350_v50 = vpop.f32.mrb[31].mxu1 }
 0x12c   :  { %v382_v55 = vpack.c.bf16 %v237_v49, %v233_v40  ;;  %v384_v56 = vpack.c.bf16 %v350_v50, %v346_v41  ;;  %1011 = vmatprep.mubr.bf16.mxu1 %v528_v44  ;;  %1124 = vmatprep.mubr.bf16.mxu0 %v530_v46 }
 0x12d   :  { %v467_v59 = vadd.bf16 %v1780_v53, %v381_v47  ;;  %v469_v60 = vadd.bf16 %v1783_v54, %v383_v48  ;;  %1012 = vmatmul.mubr.bf16.gmra.mrb[56].mxu1 %v527_v51  ;;  %1125 = vmatmul.mubr.bf16.gmra.mrb[56].mxu0 %v529_v52  ;;  %v1826_v53 = vld [vmem:[%s1877_s5] sm:$0xff] }
 0x12e   :  { %v468_v61 = vadd.bf16 %v1786_v57, %v382_v55  ;;  %v470_v62 = vadd.bf16 %v1789_v58, %v384_v56  ;;  %v1420_v54 = vcombine.high %v1826_v53, %v1826_v53  ;;  %v1295_v57 = vld [vmem:[#allocation2] sm:$0x1] }
 0x12f   :  { %v499_v63 = vmul.bf16 1045249613, %v467_v59  ;;  %v501_v0 = vmul.bf16 1045249613, %v469_v60  ;;  %1298 = vperm.xlu0 %1459, %v1295_v57  }
 0x130   :  { %v500_v2 = vmul.bf16 1045249613, %v468_v61  ;;  %v502_v3 = vmul.bf16 1045249613, %v470_v62 }
 0x131   :  { %v531_v6 = vmax.bf16 %v499_v63, %v467_v59  ;;  %v533_v7 = vmax.bf16 %v501_v0, %v469_v60  ;;  %v1418_v58 = vld.sshfl [vmem:[%s1876_s4] sm:$0x11 pattern:$0x75316420]  ;;  %s1621_s4 = smov [#allocation6]  }
 0x132   :  { %v532_v4 = vmax.bf16 %v500_v2, %v468_v61  ;;  %v534_v5 = vmax.bf16 %v502_v3, %v470_v62  ;;  %v1170_v8 = vcombine.high %v1418_v58, %v1418_v58  ;;  %v1177_v9 = vrot.slane %v1418_v58, %v1773_v38  ;;  %s1322_s5 = sshll.u32 %s1621_s4, 4  ;;  %s1323_s5 = int_to_ptr.vmem [resolvable:$true] %s1322_s5 }
 0x133   :  { %s1590_s9 = scalar_lea.vmem %s1323_s5, 16  ;;  %s1594_s10 = scalar_lea.vmem %s1323_s5, 32 }
 0x134   :  { %1021 = vmatprep.mubr.bf16.mxu1 %v532_v4  ;;  %1134 = vmatprep.mubr.bf16.mxu0 %v534_v5  ;;  %v1184_v10 = vrot.slane %v1170_v8, %v1773_v38  ;;  %v1186_v11 = vpack.i.b16 %v1177_v9, %v1177_v9  ;;  %p1591_p8 = scmp.ne.s32.totalorder %s1323_s5, %s1590_s9  ;;  %p1595_p9 = scmp.lt.s32.totalorder %s1323_s5, %s1323_s5 }
 0x135   :  { %1022 = vmatmul.mubr.bf16.gmra.mrb[60].mxu1 %v531_v6  ;;  %1135 = vmatmul.mubr.bf16.gmra.mrb[60].mxu0 %v533_v7  ;;  %p1596_p10 = scmp.lt.s32.totalorder %s1594_s10, %s1590_s9 }
 0x136   :  { %1287 = vmatprep.mubr.bf16.mxu1 %v1420_v54  ;;  %v1193_v14 = vpack.i.b16 %v1184_v10, %v1184_v10  ;;  %v1836_v21 = vrot.slane %v1186_v11, %v1777_v45 }
 0x137   :  { %p1597_p11 = por %p1596_p10, %p1595_p9 }
 0x138   :  { %v1839_v25 = vrot.slane %v1193_v14, %v1777_v45 }
 0x139   :  { %p1598_p12 = pnand %p1597_p11, %p1591_p8 }
 0x1d0   :  { %v953_v12 = vpop.f32.mrb[32].mxu1  ;;  %v1066_v13 = vpop.f32.mrb[32].mxu0 }
 0x1d1   :  { %v1067_v15 = vadd.f32 %v1066_v13, %v953_v12  ;;  %v955_v16 = vpop.f32.mrb[33].mxu1  ;;  %v1068_v17 = vpop.f32.mrb[33].mxu0 }
 0x1d2   :  { %v1069_v18 = vadd.f32 %v1068_v17, %v955_v16  ;;  %v957_v19 = vpop.f32.mrb[34].mxu1  ;;  %v1070_v20 = vpop.f32.mrb[34].mxu0 }
 0x1d3   :  { %v1071_v1 = vadd.f32 %v1070_v20, %v957_v19  ;;  %v959_v22 = vpop.f32.mrb[35].mxu1  ;;  %v1072_v23 = vpop.f32.mrb[35].mxu0 }
 0x1d4   :  { %v1073_v24 = vadd.f32 %v1072_v23, %v959_v22 }
 0x1d5   :  { %v1145_v38 = vpack.c.bf16 %v1071_v1, %v1067_v15 }
 0x1d6   :  { %v1146_v26 = vpack.c.bf16 %v1073_v24, %v1069_v18 }
 0x1d7   :  { %v1199_v27 = vadd.bf16 %v1836_v21, %v1145_v38 }
 0x1d8   :  { %v1200_v28 = vadd.bf16 %v1839_v25, %v1146_v26  ;;  %v963_v29 = vpop.f32.mrb[36].mxu1  ;;  %v1076_v30 = vpop.f32.mrb[36].mxu0 }
 0x1d9   :  { %v1215_v31 = vmul.bf16 1045249613, %v1199_v27  ;;  %v1077_v32 = vadd.f32 %v1076_v30, %v963_v29  ;;  %v965_v33 = vpop.f32.mrb[37].mxu1  ;;  %v1078_v34 = vpop.f32.mrb[37].mxu0 }
 0x1da   :  { %v1079_v35 = vadd.f32 %v1078_v34, %v965_v33  ;;  %v967_v36 = vpop.f32.mrb[38].mxu1  ;;  %v1080_v37 = vpop.f32.mrb[38].mxu0  ;;  %v1216_v39 = vmul.bf16 1045249613, %v1200_v28 }
 0x1db   :  { %v1081_v40 = vadd.f32 %v1080_v37, %v967_v36  ;;  %v969_v41 = vpop.f32.mrb[39].mxu1  ;;  %v1082_v42 = vpop.f32.mrb[39].mxu0  ;;  %v1231_v46 = vmax.bf16 %v1215_v31, %v1199_v27 }
 0x1dc   :  { %v1083_v43 = vadd.f32 %v1082_v42, %v969_v41  ;;  %v1232_v44 = vmax.bf16 %v1216_v39, %v1200_v28 }
 0x1dd   :  { %v1147_v47 = vpack.c.bf16 %v1081_v40, %v1077_v32 }
 0x1de   :  { %v1148_v48 = vpack.c.bf16 %v1083_v43, %v1079_v35  ;;  %1255 = vmatprep.subr.bf16.mxu1 %v1232_v44 }
 0x1df   :  { %v1201_v49 = vadd.bf16 %v1836_v21, %v1147_v47  ;;  %1256 = vmatpush1.bf16.xpose.msra.mxu1 %v1231_v46 }
 0x1e0   :  { %v1202_v50 = vadd.bf16 %v1839_v25, %v1148_v48  ;;  %v973_v51 = vpop.f32.mrb[40].mxu1  ;;  %v1086_v52 = vpop.f32.mrb[40].mxu0 }
 0x1e1   :  { %v1217_v55 = vmul.bf16 1045249613, %v1201_v49  ;;  %v1087_v56 = vadd.f32 %v1086_v52, %v973_v51  ;;  %v975_v59 = vpop.f32.mrb[41].mxu1  ;;  %v1088_v60 = vpop.f32.mrb[41].mxu0 }
 0x1e2   :  { %v1089_v61 = vadd.f32 %v1088_v60, %v975_v59  ;;  %v977_v62 = vpop.f32.mrb[42].mxu1  ;;  %v1090_v63 = vpop.f32.mrb[42].mxu0  ;;  %v1218_v0 = vmul.bf16 1045249613, %v1202_v50 }
 0x1e3   :  { %v1091_v2 = vadd.f32 %v1090_v63, %v977_v62  ;;  %v979_v3 = vpop.f32.mrb[43].mxu1  ;;  %v1092_v4 = vpop.f32.mrb[43].mxu0  ;;  %v1233_v7 = vmax.bf16 %v1217_v55, %v1201_v49 }
 0x1e4   :  { %v1093_v5 = vadd.f32 %v1092_v4, %v979_v3  ;;  %v1234_v6 = vmax.bf16 %v1218_v0, %v1202_v50 }
 0x1e5   :  { %v1149_v54 = vpack.c.bf16 %v1091_v2, %v1087_v56 }
 0x1e6   :  { %v1150_v57 = vpack.c.bf16 %v1093_v5, %v1089_v61  ;;  %1257 = vmatprep.subr.bf16.mxu1 %v1234_v6 }
 0x1e7   :  { %v1203_v58 = vadd.bf16 %v1836_v21, %v1149_v54  ;;  %1258 = vmatpush1.bf16.xpose.msra.mxu1 %v1233_v7 }
 0x1e8   :  { %v1204_v8 = vadd.bf16 %v1839_v25, %v1150_v57  ;;  %v983_v9 = vpop.f32.mrb[44].mxu1  ;;  %v1096_v10 = vpop.f32.mrb[44].mxu0 }
 0x1e9   :  { %v1219_v11 = vmul.bf16 1045249613, %v1203_v58  ;;  %v1097_v12 = vadd.f32 %v1096_v10, %v983_v9  ;;  %v985_v13 = vpop.f32.mrb[45].mxu1  ;;  %v1098_v14 = vpop.f32.mrb[45].mxu0 }
 0x1ea   :  { %v1099_v15 = vadd.f32 %v1098_v14, %v985_v13  ;;  %v987_v16 = vpop.f32.mrb[46].mxu1  ;;  %v1100_v17 = vpop.f32.mrb[46].mxu0  ;;  %v1220_v18 = vmul.bf16 1045249613, %v1204_v8 }
 0x1eb   :  { %v1101_v19 = vadd.f32 %v1100_v17, %v987_v16  ;;  %v989_v20 = vpop.f32.mrb[47].mxu1  ;;  %v1102_v1 = vpop.f32.mrb[47].mxu0  ;;  %v1235_v24 = vmax.bf16 %v1219_v11, %v1203_v58 }
 0x1ec   :  { %v1103_v22 = vadd.f32 %v1102_v1, %v989_v20  ;;  %v1236_v23 = vmax.bf16 %v1220_v18, %v1204_v8 }
 0x1ed   :  { %v1151_v38 = vpack.c.bf16 %v1101_v19, %v1097_v12 }
 0x1ee   :  { %v1152_v26 = vpack.c.bf16 %v1103_v22, %v1099_v15  ;;  %1259 = vmatprep.subr.bf16.mxu1 %v1236_v23 }
 0x1ef   :  { %v1205_v27 = vadd.bf16 %v1836_v21, %v1151_v38  ;;  %1260 = vmatpush1.bf16.xpose.msra.mxu1 %v1235_v24 }
 0x1f0   :  { %v1206_v28 = vadd.bf16 %v1839_v25, %v1152_v26  ;;  %v993_v29 = vpop.f32.mrb[48].mxu1  ;;  %v1106_v30 = vpop.f32.mrb[48].mxu0 }
 0x1f1   :  { %v1221_v31 = vmul.bf16 1045249613, %v1205_v27  ;;  %v1107_v32 = vadd.f32 %v1106_v30, %v993_v29  ;;  %v995_v33 = vpop.f32.mrb[49].mxu1  ;;  %v1108_v34 = vpop.f32.mrb[49].mxu0 }
 0x1f2   :  { %v1109_v35 = vadd.f32 %v1108_v34, %v995_v33  ;;  %v997_v36 = vpop.f32.mrb[50].mxu1  ;;  %v1110_v37 = vpop.f32.mrb[50].mxu0  ;;  %v1222_v39 = vmul.bf16 1045249613, %v1206_v28 }
 0x1f3   :  { %v1111_v40 = vadd.f32 %v1110_v37, %v997_v36  ;;  %v999_v41 = vpop.f32.mrb[51].mxu1  ;;  %v1112_v42 = vpop.f32.mrb[51].mxu0  ;;  %v1237_v46 = vmax.bf16 %v1221_v31, %v1205_v27 }
 0x1f4   :  { %v1113_v43 = vadd.f32 %v1112_v42, %v999_v41  ;;  %v1238_v44 = vmax.bf16 %v1222_v39, %v1206_v28 }
 0x1f5   :  { %v1153_v47 = vpack.c.bf16 %v1111_v40, %v1107_v32 }
 0x1f6   :  { %v1154_v48 = vpack.c.bf16 %v1113_v43, %v1109_v35  ;;  %1261 = vmatprep.subr.bf16.mxu1 %v1238_v44 }
 0x1f7   :  { %v1207_v49 = vadd.bf16 %v1836_v21, %v1153_v47  ;;  %1262 = vmatpush1.bf16.xpose.msra.mxu1 %v1237_v46 }
 0x1f8   :  { %v1208_v50 = vadd.bf16 %v1839_v25, %v1154_v48  ;;  %v1003_v51 = vpop.f32.mrb[52].mxu1  ;;  %v1116_v52 = vpop.f32.mrb[52].mxu0 }
 0x1f9   :  { %v1223_v55 = vmul.bf16 1045249613, %v1207_v49  ;;  %v1117_v56 = vadd.f32 %v1116_v52, %v1003_v51  ;;  %v1005_v59 = vpop.f32.mrb[53].mxu1  ;;  %v1118_v60 = vpop.f32.mrb[53].mxu0 }
 0x1fa   :  { %v1119_v61 = vadd.f32 %v1118_v60, %v1005_v59  ;;  %v1007_v62 = vpop.f32.mrb[54].mxu1  ;;  %v1120_v63 = vpop.f32.mrb[54].mxu0  ;;  %v1224_v0 = vmul.bf16 1045249613, %v1208_v50  ;;  %v1419_v59 = vcombine.low %v1826_v53, %v1826_v53 }
 0x1fb   :  { %v1121_v2 = vadd.f32 %v1120_v63, %v1007_v62  ;;  %v1009_v3 = vpop.f32.mrb[55].mxu1  ;;  %v1122_v4 = vpop.f32.mrb[55].mxu0  ;;  %v1239_v7 = vmax.bf16 %v1223_v55, %v1207_v49 }
 0x1fc   :  { %v1123_v5 = vadd.f32 %v1122_v4, %v1009_v3  ;;  %v1240_v6 = vmax.bf16 %v1224_v0, %v1208_v50  ;;  %v1299_v60 = vpop.permute.xlu0 %1298 }
 0x1fd   :  { %v1155_v54 = vpack.c.bf16 %v1121_v2, %v1117_v56 }
 0x1fe   :  { %v1156_v57 = vpack.c.bf16 %v1123_v5, %v1119_v61  ;;  %1263 = vmatprep.subr.bf16.mxu1 %v1240_v6  ;;  %v1304_v61 = vrot.slane %v1299_v60, %v1777_v45 }
 0x1ff   :  { %v1209_v58 = vadd.bf16 %v1836_v21, %v1155_v54  ;;  %1264 = vmatpush1.bf16.xpose.msra.mxu1 %v1239_v7 }
 0x200   :  { %v1210_v8 = vadd.bf16 %v1839_v25, %v1156_v57  ;;  %v1013_v9 = vpop.f32.mrb[56].mxu1  ;;  %v1126_v10 = vpop.f32.mrb[56].mxu0 }
 0x201   :  { %v1225_v11 = vmul.bf16 1045249613, %v1209_v58  ;;  %v1127_v12 = vadd.f32 %v1126_v10, %v1013_v9  ;;  %v1015_v13 = vpop.f32.mrb[57].mxu1  ;;  %v1128_v14 = vpop.f32.mrb[57].mxu0 }
 0x202   :  { %v1129_v15 = vadd.f32 %v1128_v14, %v1015_v13  ;;  %v1017_v16 = vpop.f32.mrb[58].mxu1  ;;  %v1130_v17 = vpop.f32.mrb[58].mxu0  ;;  %v1226_v18 = vmul.bf16 1045249613, %v1210_v8 }
 0x203   :  { %v1131_v19 = vadd.f32 %v1130_v17, %v1017_v16  ;;  %v1019_v20 = vpop.f32.mrb[59].mxu1  ;;  %v1132_v1 = vpop.f32.mrb[59].mxu0  ;;  %v1241_v24 = vmax.bf16 %v1225_v11, %v1209_v58 }
 0x204   :  { %v1133_v22 = vadd.f32 %v1132_v1, %v1019_v20  ;;  %v1242_v23 = vmax.bf16 %v1226_v18, %v1210_v8 }
 0x205   :  { %v1157_v38 = vpack.c.bf16 %v1131_v19, %v1127_v12 }
 0x206   :  { %v1158_v26 = vpack.c.bf16 %v1133_v22, %v1129_v15  ;;  %1265 = vmatprep.subr.bf16.mxu1 %v1242_v23 }
 0x207   :  { %v1211_v27 = vadd.bf16 %v1836_v21, %v1157_v38  ;;  %1266 = vmatpush1.bf16.xpose.msra.mxu1 %v1241_v24 }
 0x208   :  { %v1212_v28 = vadd.bf16 %v1839_v25, %v1158_v26  ;;  %v1023_v29 = vpop.f32.mrb[60].mxu1  ;;  %v1136_v30 = vpop.f32.mrb[60].mxu0 }
 0x209   :  { %v1227_v31 = vmul.bf16 1045249613, %v1211_v27  ;;  %v1137_v32 = vadd.f32 %v1136_v30, %v1023_v29  ;;  %v1025_v33 = vpop.f32.mrb[61].mxu1  ;;  %v1138_v34 = vpop.f32.mrb[61].mxu0 }
 0x20a   :  { %v1139_v35 = vadd.f32 %v1138_v34, %v1025_v33  ;;  %v1027_v36 = vpop.f32.mrb[62].mxu1  ;;  %v1140_v37 = vpop.f32.mrb[62].mxu0  ;;  %v1228_v39 = vmul.bf16 1045249613, %v1212_v28 }
 0x20b   :  { %v1141_v40 = vadd.f32 %v1140_v37, %v1027_v36  ;;  %v1029_v41 = vpop.f32.mrb[63].mxu1  ;;  %v1142_v42 = vpop.f32.mrb[63].mxu0  ;;  %v1243_v46 = vmax.bf16 %v1227_v31, %v1211_v27 }
 0x20c   :  { %v1143_v43 = vadd.f32 %v1142_v42, %v1029_v41  ;;  %v1244_v44 = vmax.bf16 %v1228_v39, %v1212_v28 }
 0x20d   :  { %v1159_v47 = vpack.c.bf16 %v1141_v40, %v1137_v32 }
 0x20e   :  { %v1160_v48 = vpack.c.bf16 %v1143_v43, %v1139_v35  ;;  %1267 = vmatprep.subr.bf16.mxu1 %v1244_v44 }
 0x20f   :  { %v1213_v49 = vadd.bf16 %v1836_v21, %v1159_v47  ;;  %1268 = vmatpush1.bf16.xpose.msra.mxu1 %v1243_v46 }
 0x210   :  { %v1214_v50 = vadd.bf16 %v1839_v25, %v1160_v48 }
 0x211   :  { %v1229_v51 = vmul.bf16 1045249613, %v1213_v49 }
 0x212   :  { %v1230_v52 = vmul.bf16 1045249613, %v1214_v50 }
 0x213   :  { %v1245_v56 = vmax.bf16 %v1229_v51, %v1213_v49 }
 0x214   :  { %v1246_v55 = vmax.bf16 %v1230_v52, %v1214_v50 }
 0x216   :  { %1269 = vmatprep.subr.bf16.mxu1 %v1246_v55 }
 0x217   :  { %1270 = vmatpush1.bf16.xpose.msra.mxu1 %v1245_v56 }
 0x21e   :  { %1288 = vmatmul.mubr.bf16.vlgmr.msra.gmra.mrb[64].mxu1 %v1419_v59 }
 0x2f1   :  { %v1289_v62 = vpop.f32.mrb[64].mxu1 }
 0x2f2   :  { %v1305_v63 = vadd.f32 %v1304_v61, %v1289_v62  ;;  %v1291_v0 = vpop.f32.mrb[65].mxu1 }
 0x2f3   :  { %v1292_v21 = vpop.f32.mrb[66].mxu1 }
 0x2f4   :  { %v1306_v2 = vand.u32 2147483647, %v1305_v63  ;;  %v1293_v3 = vpop.f32.mrb[67].mxu1  ;;  %vm1312_vm2 = vcmp.ge.f32.partialorder %v1305_v63, 0.0 }
 0x2f6   :  { %v1307_v25 = vsub.f32 0.0, %v1306_v2 }
 0x2f8   :  { %v1308_v4 = vmul.f32 1.442695, %v1307_v25 }
 0x2fa   :  { %1564 = vpow2.f32 %v1308_v4 }
 0x304   :  { %v1565_v5 = vpop.eup %1564 }
 0x305   :  { %v1310_v6 = vadd.f32 1.0, %v1565_v5 }
 0x307   :  { %1566 = vrcp.f32 %v1310_v6 }
 0x311   :  { %v1567_v7 = vpop.eup %1566 }
 0x312   :  { %v1313_v53 = vmul.f32 %v1567_v7, %v1565_v5 }
 0x314   :  { %v1314_v54 = vsel %vm1312_vm2, %v1567_v7, %v1313_v53 }
 0x315   :  { %1315 = vst [vmem:[#allocation6] sm:$0x1] %v1314_v54 }
 0x316   :  { %1601 = shalt.err (!%p1598_p12)
}
 0x317   :  { %s1602_s12 = scalar_lea.hbm %s1879_s7, 16 }
 0x318   :  { %p1603_p13 = scmp.ne.s32.totalorder %s1879_s7, %s1602_s12  ;;  %p1606_p0 = scmp.lt.u32.totalorder %s1602_s12, %s1879_s7 }
 0x31a   :  { %p1608_p1 = pnand %p1606_p0, %p1603_p13 }
 0x31c   :  { %1611 = shalt.err (!%p1608_p1)
}
 0x31d   :  { %1325 = dma.vmem_to_hbm [thread:$0]  %s1323_s5, 16, %s1879_s7, [#allocation5]  }
 0x31e   :  { %1614 = dma.done.wait [#allocation5], 16  }
 0x31f   :  { %1615 = vsyncadd [#allocation5], 4294967280 }
 0x320   :  { %1329 = vsyncpa [#allocation4], 1 }
 0x321   :  { %1330 = vsyncpa [#allocation5], 1 }

</bundles_post_ra>
